<compile_context>
chip_gen: v6e
topology: v6e:2x2x1
jax: 0.10.0
libtpu: 0.0.40
codegen_flags: <defaults>
</compile_context>

<pallas_src>
import functools

import jax
import jax.numpy as jnp
from jax.experimental import pallas as pl
from jax.experimental.pallas import tpu as pltpu


def _round_up(x, m):
    return (x + m - 1) // m * m


def _linear_block_kernel(x_ref, w_ref, b_ref, o_ref, acc_ref, *, activation, mxu_bf16):
    """One (row-tile, col-tile) output block, accumulated over the K grid axis.

    x_ref : (tm, tk)  input rows
    w_ref : (tk, tn)  weight, stored (in, out) = torch (out, in).T
    b_ref : (1, tn)   bias
    o_ref : (tm, tn)  output rows
    acc_ref: (tm, tn) f32 accumulator scratch (persists across the K axis)
    """
    k = pl.program_id(2)

    @pl.when(k == 0)
    def _():
        acc_ref[...] = jnp.zeros_like(acc_ref)

    x = x_ref[...]
    w = w_ref[...]
    if mxu_bf16:
        # bf16-native MXU on v5e/v6e/v7x; accumulation stays f32.
        x = x.astype(jnp.bfloat16)
        w = w.astype(jnp.bfloat16)
    acc_ref[...] += jnp.dot(x, w, preferred_element_type=jnp.float32)

    @pl.when(k == pl.num_programs(2) - 1)
    def _():
        out = acc_ref[...] + b_ref[...]            # (1, tn) broadcasts over rows (VPU)
        if activation == "relu":
            out = jnp.maximum(out, 0.0)
        elif activation == "lrelu":
            out = jnp.where(out >= 0.0, out, 0.2 * out)
        elif activation == "tanh":
            out = jnp.tanh(out)                    # EUP slot
        # activation == "none": passthrough
        o_ref[...] = out.astype(o_ref.dtype)


def linear_block(x, w, b, *, activation="relu", out_dtype=None):
    """LinearBlock forward (norm='none').

    x : (M, K)  input
    w : (K, N)  weight (= torch weight (out, in) transposed)
    b : (N,)    bias
    returns (M, N) in out_dtype (default: x.dtype)
    """
    M, K = x.shape
    Kw, N = w.shape
    assert K == Kw and b.shape == (N,)
    out_dtype = out_dtype or x.dtype

    # --- lane-dense N: pad columns to a multiple of 128 (unmasked stores) ---
    N_pad = N if N % 128 == 0 else _round_up(N, 128)
    if N_pad != N:
        w = jnp.pad(w, ((0, 0), (0, N_pad - N)))
        b = jnp.pad(b, (0, N_pad - N))

    # --- row tiles: <=512 rows, partial last tile ok, >=2 tiles when M>=16 (v7x) ---
    if M <= 16:
        tm = M
    else:
        tm = min(512, M)
        if pl.cdiv(M, tm) < 2:
            tm = _round_up(pl.cdiv(M, 2), 8)

    # --- column tiles: keep each weight/output tile VMEM-friendly ---
    tn = N_pad
    if N_pad > 512:
        for cand in (512, 384, 256, 128):
            if N_pad % cand == 0:
                tn = cand
                break

    # --- K tiles: only split very large K (reduction handled by the accumulator) ---
    tk = K
    if K > 2048:
        for cand in (2048, 1024, 512, 256, 128):
            if K % cand == 0:
                tk = cand
                break

    gm = pl.cdiv(M, tm)
    gn = pl.cdiv(N_pad, tn)
    gk = pl.cdiv(K, tk)

    mxu_bf16 = K >= 128  # neutral below MXU depth; 2-4x matmul win at production K

    kernel = functools.partial(
        _linear_block_kernel, activation=activation, mxu_bf16=mxu_bf16
    )

    # Raise the scoped VMEM cap only if the tile working set needs it.
    cp_kwargs = dict(dimension_semantics=("parallel", "parallel", "arbitrary"))
    need_bytes = 4 * (2 * tm * tk + 2 * tk * tn + 3 * tm * tn) + 4 * tn
    if need_bytes > (32 << 20):
        cp_kwargs["vmem_limit_bytes"] = min(int(need_bytes * 1.2), 128 << 20)

    out = pl.pallas_call(
        kernel,
        out_shape=jax.ShapeDtypeStruct((M, N_pad), out_dtype),
        grid=(gm, gn, gk),
        in_specs=[
            pl.BlockSpec((tm, tk), lambda i, j, k: (i, k)),   # x row/K tile
            pl.BlockSpec((tk, tn), lambda i, j, k: (k, j)),   # weight K/col tile
            pl.BlockSpec((1, tn), lambda i, j, k: (0, j)),    # bias col tile
        ],
        out_specs=pl.BlockSpec((tm, tn), lambda i, j, k: (i, j)),
        scratch_shapes=[pltpu.VMEM((tm, tn), jnp.float32)],
        compiler_params=pltpu.CompilerParams(**cp_kwargs),
        cost_estimate=pl.CostEstimate(
            flops=2 * M * K * N_pad,
            transcendentals=(M * N_pad if activation == "tanh" else 0),
            bytes_accessed=4 * (M * K + K * N_pad + M * N_pad),
        ),
    )(x, w, b.reshape(1, N_pad))

    if N_pad != N:
        out = out[:, :N]
    return out


if __name__ == "__main__":
    key = jax.random.PRNGKey(0)

    # --- primary demo: small shapes implied by the module (batch of row vectors) ---
    B, IN_NC, OUT_NC = 8, 32, 128
    kx, kw, kb, kx2, kw2, kb2 = jax.random.split(key, 6)
    x = jax.random.normal(kx, (B, IN_NC), jnp.float32)
    # torch nn.Linear weight is (out, in); we store its transpose (in, out).
    w = jax.random.normal(kw, (IN_NC, OUT_NC), jnp.float32) * 0.1
    b = jax.random.normal(kb, (OUT_NC,), jnp.float32) * 0.1

    out = linear_block(x, w, b, activation="relu")
    jax.block_until_ready(out)
    ref = jnp.maximum(x @ w + b, 0.0)
    assert out.shape == (B, OUT_NC)
    assert jnp.all(jnp.isfinite(out))
    assert jnp.allclose(out, ref, atol=1e-5, rtol=1e-5)

    # --- secondary check: multi-row-tile, padded-N, bf16-MXU path ---
    M2, K2, N2 = 40, 160, 96
    x2 = jax.random.normal(kx2, (M2, K2), jnp.float32)
    w2 = jax.random.normal(kw2, (K2, N2), jnp.float32) * 0.1
    b2 = jax.random.normal(kb2, (N2,), jnp.float32) * 0.1
    out2 = linear_block(x2, w2, b2, activation="relu")
    jax.block_until_ready(out2)
    ref2 = jnp.maximum(x2 @ w2 + b2, 0.0)
    assert out2.shape == (M2, N2)
    assert jnp.all(jnp.isfinite(out2))
    assert jnp.allclose(out2, ref2, atol=1e-1, rtol=5e-2)  # bf16 MXU tolerance

    print("KERNEL_OK")
</pallas_src>

<mosaic_0001>
module attributes {stable_mosaic.version = 11 : i64} {
  func.func @_linear_block_kernel(%arg0: i32, %arg1: i32, %arg2: i32, %arg3: memref<8x32xf32, #tpu.memory_space<vmem>>, %arg4: memref<32x128xf32, #tpu.memory_space<vmem>>, %arg5: memref<1x128xf32, #tpu.memory_space<vmem>>, %arg6: memref<8x128xf32, #tpu.memory_space<vmem>>, %arg7: memref<8x128xf32, #tpu.memory_space<vmem>>) attributes {dimension_semantics = [#tpu.dimension_semantics<parallel>, #tpu.dimension_semantics<parallel>, #tpu.dimension_semantics<arbitrary>], iteration_bounds = array<i64: 1, 1, 1>, scalar_prefetch = 0 : i64, scratch_operands = 1 : i64, tpu.core_type = #tpu.core_type<tc>, window_params = [{transform_indices = @transform_0, window_bounds = array<i64: 8, 32>}, {transform_indices = @transform_1, window_bounds = array<i64: 32, 128>}, {transform_indices = @transform_2, window_bounds = array<i64: 1, 128>}, {transform_indices = @transform_3, window_bounds = array<i64: 8, 128>}]} {
    %c0_i32 = arith.constant 0 : i32
    %0 = arith.cmpi eq, %arg2, %c0_i32 : i32
    %1 = arith.extui %0 : i1 to i32
    %c0_i32_0 = arith.constant 0 : i32
    %2 = arith.cmpi ne, %1, %c0_i32_0 : i32
    scf.if %2 {
      %cst_10 = arith.constant 0.000000e+00 : f32
      %12 = vector.broadcast %cst_10 : f32 to vector<8x128xf32>
      %c0_11 = arith.constant 0 : index
      %c0_12 = arith.constant 0 : index
      %13 = vector.load %arg7[%c0_11, %c0_12] : memref<8x128xf32, #tpu.memory_space<vmem>>, vector<8x128xf32>
      tpu.vector_store %arg7[%c0_11, %c0_12], %12 {strides = array<i32>} : memref<8x128xf32, #tpu.memory_space<vmem>>, vector<8x128xf32>,
    } else {
    }
    %c0 = arith.constant 0 : index
    %c0_1 = arith.constant 0 : index
    %3 = vector.load %arg3[%c0, %c0_1] : memref<8x32xf32, #tpu.memory_space<vmem>>, vector<8x32xf32>
    %c0_2 = arith.constant 0 : index
    %c0_3 = arith.constant 0 : index
    %4 = vector.load %arg4[%c0_2, %c0_3] : memref<32x128xf32, #tpu.memory_space<vmem>>, vector<32x128xf32>
    %c0_4 = arith.constant 0 : index
    %c0_5 = arith.constant 0 : index
    %5 = vector.load %arg7[%c0_4, %c0_5] : memref<8x128xf32, #tpu.memory_space<vmem>>, vector<8x128xf32>
    %cst = arith.constant dense<0.000000e+00> : vector<8x128xf32>
    %6 = tpu.matmul %3, %4, %cst {dimension_numbers = #tpu.dot_dimension_numbers<[1], [0], [0], [1], [0, 0, 1, 1], [], []>} : vector<8x32xf32>, vector<32x128xf32>, vector<8x128xf32> -> vector<8x128xf32>
    %7 = arith.addf %5, %6 : vector<8x128xf32>
    %c0_6 = arith.constant 0 : index
    %c0_7 = arith.constant 0 : index
    %8 = vector.load %arg7[%c0_6, %c0_7] : memref<8x128xf32, #tpu.memory_space<vmem>>, vector<8x128xf32>
    tpu.vector_store %arg7[%c0_6, %c0_7], %7 {strides = array<i32>} : memref<8x128xf32, #tpu.memory_space<vmem>>, vector<8x128xf32>,
    %c0_i32_8 = arith.constant 0 : i32
    %9 = arith.cmpi eq, %arg2, %c0_i32_8 : i32
    %10 = arith.extui %9 : i1 to i32
    %c0_i32_9 = arith.constant 0 : i32
    %11 = arith.cmpi ne, %10, %c0_i32_9 : i32
    scf.if %11 {
      %c0_10 = arith.constant 0 : index
      %c0_11 = arith.constant 0 : index
      %12 = vector.load %arg7[%c0_10, %c0_11] : memref<8x128xf32, #tpu.memory_space<vmem>>, vector<8x128xf32>
      %c0_12 = arith.constant 0 : index
      %c0_13 = arith.constant 0 : index
      %13 = vector.load %arg5[%c0_12, %c0_13] : memref<1x128xf32, #tpu.memory_space<vmem>>, vector<1x128xf32>
      %14 = vector.broadcast %13 : vector<1x128xf32> to vector<8x128xf32>
      %15 = arith.addf %12, %14 : vector<8x128xf32>
      %cst_14 = arith.constant 0.000000e+00 : f32
      %16 = vector.broadcast %cst_14 : f32 to vector<8x128xf32>
      %17 = arith.maximumf %15, %16 : vector<8x128xf32>
      %c0_15 = arith.constant 0 : index
      %c0_16 = arith.constant 0 : index
      %18 = vector.load %arg6[%c0_15, %c0_16] : memref<8x128xf32, #tpu.memory_space<vmem>>, vector<8x128xf32>
      tpu.vector_store %arg6[%c0_15, %c0_16], %17 {strides = array<i32>} : memref<8x128xf32, #tpu.memory_space<vmem>>, vector<8x128xf32>,
    } else {
    }
    return
  }
  func.func @transform_0(%arg0: i32, %arg1: i32, %arg2: i32) -> (i32, i32) {
    %c0_i32 = arith.constant 0 : i32
    return %arg0, %arg2 : i32, i32
  }
  func.func @transform_1(%arg0: i32, %arg1: i32, %arg2: i32) -> (i32, i32) {
    %c0_i32 = arith.constant 0 : i32
    return %arg2, %arg1 : i32, i32
  }
  func.func @transform_2(%arg0: i32, %arg1: i32, %arg2: i32) -> (i32, i32) {
    %c0_i32 = arith.constant 0 : i32
    %c0_i32_0 = arith.constant 0 : i32
    return %c0_i32, %arg1 : i32, i32
  }
  func.func @transform_3(%arg0: i32, %arg1: i32, %arg2: i32) -> (i32, i32) {
    %c0_i32 = arith.constant 0 : i32
    return %arg0, %arg1 : i32, i32
  }
}

</mosaic_0001>

<bundles_post_ra>
// kernel: tpu_custom_call.1
= control target key start
LH: loop header
LB: loop body
LE: loop exit
PB: predicated region body
PF: predicated region fallthrough
CT: control target
= control target key end

     0   :  { %8 = vsyncpa [#allocation4], 0  ;;  %s288_s0 = inlined_call_operand.hbm [shape: f32[8,32], index: 0, kind: input, shape index: {}]   ;;  %s289_s1 = inlined_call_operand.hbm [shape: f32[32,128], index: 1, kind: input, shape index: {}]   ;;  %s290_s2 = inlined_call_operand.vmem [shape: f32[1,128], index: 2, kind: input, shape index: {}]   ;;  %s291_s3 = inlined_call_operand.hbm [shape: f32[8,128], index: 3, kind: output, shape index: {}]  }
   0x1   :  { %9 = vsyncpa [#allocation7], 0 }
   0x2   :  { %10 = vsyncpa [#allocation5], 0  ;;  %s249_s12 = smov [#allocation3]   ;;  %s250_s14 = smov [#allocation6]  }
   0x3   :  { %s17_s13 = sshll.u32 %s249_s12, 4  ;;  %s26_s15 = sshll.u32 %s250_s14, 4  ;;  %s18_s13 = int_to_ptr.vmem [resolvable:$true] %s17_s13  ;;  %s27_s15 = int_to_ptr.vmem [resolvable:$true] %s26_s15 }
   0x4   :  { %s191_s16 = scalar_lea.vmem %s18_s13, 128  ;;  %p196_p1 = scmp.lt.s32.totalorder %s18_s13, %s18_s13 }
   0x5   :  { %p192_p0 = scmp.ne.s32.totalorder %s18_s13, %s191_s16  ;;  %p197_p2 = scmp.lt.s32.totalorder %s191_s16, %s191_s16 }
   0x7   :  { %p198_p3 = por %p197_p2, %p196_p1 }
   0x9   :  { %p199_p4 = pnand %p198_p3, %p192_p0 }
   0xb   :  { %202 = shalt.err (!%p199_p4)
}
   0xc   :  { %20 = dma.hbm_to_vmem [thread:$0]  %s288_s0, 128, %s18_s13, [#allocation4]  }
   0xd   :  { %s211_s19 = scalar_lea.vmem %s27_s15, 512  ;;  %p216_p6 = scmp.lt.s32.totalorder %s27_s15, %s27_s15 }
   0xe   :  { %p212_p5 = scmp.ne.s32.totalorder %s27_s15, %s211_s19  ;;  %p217_p7 = scmp.lt.s32.totalorder %s211_s19, %s211_s19 }
  0x10   :  { %p218_p8 = por %p217_p7, %p216_p6 }
  0x12   :  { %p219_p9 = pnand %p218_p8, %p212_p5 }
  0x14   :  { %222 = shalt.err (!%p219_p9)
}
  0x15   :  { %s251_s20 = smov 128   ;;  %s252_s21 = smov 8  }
  0x16   :  { %32 = dma.hbm_to_vmem [thread:$0]  %s289_s1, 512, %s27_s15, [#allocation7], %s251_s20, %s251_s20, %s252_s21  }
  0x17   :  { %243 = dma.done.wait [#allocation4], 128  }
  0x18   :  { %244 = vsyncadd [#allocation4], 4294967168 }
  0x19   :  { %245 = dma.done.wait [#allocation7], 512  }
  0x1a   :  { %246 = vsyncadd [#allocation7], 4294966784  ;;  %v253_v0 = vmov 0.0   ;;  %vm254_vm0 = vmmov 0   ;;  %v50_v1 = vld [vmem:[#allocation6 + $0x18] sm:$0xff]  ;;  %v49_v2 = vld [vmem:[#allocation6 + $0x10] sm:$0xff] }
  0x1b   :  { %165 = vmatprep.subr.mxu0 %v253_v0  ;;  %173 = vmatprep.mubr.msk.f32.mxu0 %vm254_vm0, %v253_v0  ;;  %v48_v3 = vld [vmem:[#allocation6 + $0x8] sm:$0xff]  ;;  %v47_v4 = vld [vmem:[#allocation6] sm:$0xff]  ;;  %v46_v5 = vld [vmem:[#allocation3] sm:$0xff]  ;;  %vm52_vm1 = vcmask 261120   ;;  %s255_s24 = smov [#allocation8]  }
  0x1c   :  { %166 = vmatpush3.msra.mxu0 %v50_v1  ;;  %v159_v6 = vld [vmem:[%s290_s2] ss:$0 sm:$0xff]  ;;  %s148_s25 = sshll.u32 %s255_s24, 4  ;;  %s149_s25 = int_to_ptr.vmem [resolvable:$true] %s148_s25 }
  0x1d   :  { %167 = vmatprep.subr.mxu0 %v253_v0  ;;  %s223_s26 = scalar_lea.vmem %s149_s25, 128  ;;  %p228_p11 = scmp.lt.s32.totalorder %s149_s25, %s149_s25 }
  0x1e   :  { %168 = vmatpush3.msra.mxu0 %v49_v2  ;;  %p224_p10 = scmp.ne.s32.totalorder %s149_s25, %s223_s26  ;;  %p229_p12 = scmp.lt.s32.totalorder %s223_s26, %s223_s26 }
  0x1f   :  { %169 = vmatprep.subr.mxu0 %v253_v0 }
  0x20   :  { %170 = vmatpush3.msra.mxu0 %v48_v3  ;;  %p230_p13 = por %p229_p12, %p228_p11 }
  0x21   :  { %171 = vmatprep.subr.mxu0 %v253_v0 }
  0x22   :  { %172 = vmatpush3.msra.mxu0 %v47_v4  ;;  %p231_p0 = pnand %p230_p13, %p224_p10 }
  0x23   :  { %174 = vmatmul.mubr.msk.f32.vlgmr.msra.gmra.mxu0 %vm52_vm1, %v46_v5 }
  0xe3   :  { %v122_v7 = vpop.f32.mrf.mxu0 }
  0xe4   :  { %v139_v8 = vadd.f32 %v159_v6, %v122_v7 }
  0xe5   :  { %v175_v9 = vpop.f32.mrf.mxu0 }
  0xe6   :  { %v140_v10 = vmax.f32 %v139_v8, 0.0 }
  0xe8   :  { %141 = vst [vmem:[#allocation8] sm:$0xff] %v140_v10 }
  0xe9   :  { %234 = shalt.err (!%p231_p0)
}
  0xea   :  { %151 = dma.vmem_to_hbm [thread:$0]  %s149_s25, 128, %s291_s3, [#allocation5]  }
  0xeb   :  { %247 = dma.done.wait [#allocation5], 128  }
  0xec   :  { %248 = vsyncadd [#allocation5], 4294967168 }
  0xed   :  { %155 = vsyncpa [#allocation4], 1 }
  0xee   :  { %156 = vsyncpa [#allocation7], 1 }
  0xef   :  { %157 = vsyncpa [#allocation5], 1 }

</bundles_post_ra>
